<compile_context>
chip_gen: v5e
topology: v5e:2x2
jax: 0.10.0
libtpu: 0.0.40
codegen_flags: <defaults>
</compile_context>

<pallas_src>
import functools

import numpy as np
import jax
import jax.numpy as jnp
from jax.experimental import pallas as pl
from jax.experimental.pallas import tpu as pltpu


def _edge_v_kernel(x1_ref, x2_ref, mask_ref, p1_ref, p2_ref, *, shift, groups):
    x1 = x1_ref[...].astype(jnp.float32)        # (b, hw_pad)
    x2 = x2_ref[...].astype(jnp.float32)

    # In the flattened (h*W + col) layout the vertically-adjacent pixel
    # x[h+1, col] sits exactly W lanes to the right, so the "down" operand is a
    # lane roll by hw_pad - W (== -W mod hw_pad).  Wrapped-around lanes (last
    # image row) and any lane padding are killed by the precomputed mask.
    n1 = pltpu.roll(x1, shift=shift, axis=1)
    n2 = pltpu.roll(x2, shift=shift, axis=1)
    d1 = jnp.abs(x1 - n1)
    d2 = jnp.abs(x2 - n2)

    # Fold rows in sublane-tile groups of 8 (8-aligned static slices -> pure
    # VALU adds, no relayout), deferring all cross-lane work to one tiny reduce.
    f1 = d1[0:8, :]
    f2 = d2[0:8, :]
    for i in range(1, groups):
        f1 = f1 + d1[i * 8:(i + 1) * 8, :]
        f2 = f2 + d2[i * 8:(i + 1) * 8, :]

    m = mask_ref[...]                           # (1, hw_pad), hoisted constant
    p1_ref[...] = jnp.full((1, 1, 1), jnp.sum(f1 * m), dtype=jnp.float32)
    p2_ref[...] = jnp.full((1, 1, 1), jnp.sum(f2 * m), dtype=jnp.float32)


def _vmem_limit_bytes():
    cap = 128 * 1024 * 1024
    try:
        info = pltpu.get_tpu_info()
        cap = int(getattr(info, "vmem_capacity_bytes", cap))
    except Exception:
        pass
    # ~48 MiB on v7x (64 MiB physical), 96 MiB on v5e/v6e (128 MiB physical).
    return int(min(3 * cap // 4, 96 * 1024 * 1024))


def _choose_block_rows(rows8, hw_pad, itemsize, vmem_limit):
    """Rows per block: ~8 MiB blocks, bounded by the per-buffer VMEM share."""
    row_bytes = hw_pad * itemsize
    per_buffer = (vmem_limit - (4 << 20)) // 4      # 2 inputs x 2 pipeline bufs
    budget = min(8 * 1024 * 1024, max(per_buffer, 8 * row_bytes))
    b = max(8, (budget // row_bytes) // 8 * 8)      # keep sublane dim 8-aligned
    return min(b, rows8)
    # TODO(synk): for huge images where even one 8-row block exceeds the budget,
    # add a lane-tiled grid axis and handle the row seam in the roll/mask.


def edge_v_sums(x1, x2):
    """Returns (sum|dV X1|, sum|dV X2|) computed in a single Pallas kernel."""
    n, c, h, w = x1.shape
    assert x2.shape == x1.shape
    hw = h * w
    hw_pad = max(128, -(-hw // 128) * 128)          # lane-pad rows to 128-mult
    rows = n * c
    rows8 = -(-rows // 8) * 8

    vmem_limit = _vmem_limit_bytes()
    itemsize = jnp.dtype(x1.dtype).itemsize
    b = _choose_block_rows(rows8, hw_pad, itemsize, vmem_limit)
    nb = -(-rows8 // b)
    rows_pad = nb * b

    x1r = x1.reshape(rows, hw)
    x2r = x2.reshape(rows, hw)
    pad_r = rows_pad - rows
    pad_l = hw_pad - hw
    if pad_r or pad_l:
        # zero rows / zero lanes contribute 0 to both sums
        x1r = jnp.pad(x1r, ((0, pad_r), (0, pad_l)))
        x2r = jnp.pad(x2r, ((0, pad_r), (0, pad_l)))

    # Lanes >= hw - w are either the wrapped-around last image row or lane
    # padding; both are dropped.  Built once here, not per grid step.
    mask = (jnp.arange(hw_pad, dtype=jnp.int32) < (hw - w)).astype(jnp.float32)
    mask = mask.reshape(1, hw_pad)

    kernel = functools.partial(_edge_v_kernel, shift=hw_pad - w, groups=b // 8)

    p1, p2 = pl.pallas_call(
        kernel,
        out_shape=(jax.ShapeDtypeStruct((nb, 1, 1), jnp.float32),
                   jax.ShapeDtypeStruct((nb, 1, 1), jnp.float32)),
        grid_spec=pltpu.PrefetchScalarGridSpec(
            num_scalar_prefetch=0,
            grid=(nb,),
            in_specs=[
                pl.BlockSpec((b, hw_pad), lambda i: (i, 0)),
                pl.BlockSpec((b, hw_pad), lambda i: (i, 0)),
                pl.BlockSpec((1, hw_pad), lambda i: (0, 0)),   # constant -> fetched once
            ],
            out_specs=(
                pl.BlockSpec((1, 1, 1), lambda i: (i, 0, 0)),
                pl.BlockSpec((1, 1, 1), lambda i: (i, 0, 0)),
            ),
        ),
        compiler_params=pltpu.CompilerParams(
            dimension_semantics=("parallel",),
            vmem_limit_bytes=vmem_limit),
    )(x1r, x2r, mask)

    return jnp.sum(p1), jnp.sum(p2)


def edge_v_loss(x1, x2):
    """Exact PyTorch semantics: -np.log(int(s1) / int(s2)) on host."""
    s1, s2 = edge_v_sums(x1, x2)
    s1 = float(jax.block_until_ready(s1))
    s2 = float(jax.block_until_ready(s2))
    # Matches PyTorch: int() truncation then true division.  Raises
    # ZeroDivisionError if int(s2) == 0 (e.g. H == 1), exactly as the original.
    return -np.log(int(s1) / int(s2))


def edge_v_loss_on_device(x1, x2):
    """Jittable variant (floor == int() for non-negative sums); no host sync."""
    s1, s2 = edge_v_sums(x1, x2)
    return -jnp.log(jnp.floor(s1) / jnp.floor(s2))


if __name__ == "__main__":
    key = jax.random.PRNGKey(0)
    k1, k2 = jax.random.split(key)
    # small NCHW shapes consistent with the module's conv-style inputs
    x1 = jax.random.normal(k1, (2, 4, 16, 16), dtype=jnp.float32)
    x2 = jax.random.normal(k2, (2, 4, 16, 16), dtype=jnp.float32) * 2.0

    s1, s2 = edge_v_sums(x1, x2)
    s1 = jax.block_until_ready(s1)
    s2 = jax.block_until_ready(s2)
    loss = edge_v_loss(x1, x2)
    loss_dev = jax.block_until_ready(edge_v_loss_on_device(x1, x2))

    # plain-numpy reference of the forward semantics
    a1 = np.asarray(x1, dtype=np.float32)
    a2 = np.asarray(x2, dtype=np.float32)
    r1 = np.abs(a1[:, :, :-1, :] - a1[:, :, 1:, :]).sum()
    r2 = np.abs(a2[:, :, :-1, :] - a2[:, :, 1:, :]).sum()
    ref_loss = -np.log(int(r1) / int(r2))

    assert np.allclose(float(s1), r1, rtol=1e-4, atol=1e-2), (float(s1), r1)
    assert np.allclose(float(s2), r2, rtol=1e-4, atol=1e-2), (float(s2), r2)
    # Slightly loose tolerance: int()/floor truncation can flip by 1 when a sum
    # lands within float-accumulation noise of an integer boundary.
    assert np.allclose(loss, ref_loss, rtol=2e-3, atol=2e-3), (loss, ref_loss)
    assert np.allclose(float(loss_dev), ref_loss, rtol=2e-3, atol=2e-3), (
        float(loss_dev), ref_loss)

    print("KERNEL_OK")
</pallas_src>

<mosaic_0001>
module attributes {stable_mosaic.version = 11 : i64} {
  func.func @_edge_v_kernel(%arg0: i32, %arg1: memref<8x256xf32, #tpu.memory_space<vmem>>, %arg2: memref<8x256xf32, #tpu.memory_space<vmem>>, %arg3: memref<1x256xf32, #tpu.memory_space<vmem>>, %arg4: memref<1x1x1xf32, #tpu.memory_space<vmem>>, %arg5: memref<1x1x1xf32, #tpu.memory_space<vmem>>) attributes {dimension_semantics = [#tpu.dimension_semantics<parallel>], iteration_bounds = array<i64: 1>, scalar_prefetch = 0 : i64, scratch_operands = 0 : i64, tpu.core_type = #tpu.core_type<tc>, window_params = [{transform_indices = @transform_0, window_bounds = array<i64: 8, 256>}, {transform_indices = @transform_1, window_bounds = array<i64: 8, 256>}, {pipeline_mode = #tpu.pipeline_mode<synchronous>, transform_indices = @transform_2, window_bounds = array<i64: 1, 256>}, {transform_indices = @transform_3, window_bounds = array<i64: 1, 1, 1>}, {transform_indices = @transform_4, window_bounds = array<i64: 1, 1, 1>}]} {
    %c0 = arith.constant 0 : index
    %c0_0 = arith.constant 0 : index
    %0 = vector.load %arg1[%c0, %c0_0] : memref<8x256xf32, #tpu.memory_space<vmem>>, vector<8x256xf32>
    %c0_1 = arith.constant 0 : index
    %c0_2 = arith.constant 0 : index
    %1 = vector.load %arg2[%c0_1, %c0_2] : memref<8x256xf32, #tpu.memory_space<vmem>>, vector<8x256xf32>
    %c240_i32 = arith.constant 240 : i32
    %2 = tpu.dynamic_rotate %0 by %c240_i32 dim 1 : vector<8x256xf32>, i32 -> vector<8x256xf32>
    %c240_i32_3 = arith.constant 240 : i32
    %3 = tpu.dynamic_rotate %1 by %c240_i32_3 dim 1 : vector<8x256xf32>, i32 -> vector<8x256xf32>
    %4 = arith.subf %0, %2 : vector<8x256xf32>
    %5 = math.absf %4 : vector<8x256xf32>
    %6 = arith.subf %1, %3 : vector<8x256xf32>
    %7 = math.absf %6 : vector<8x256xf32>
    %c0_4 = arith.constant 0 : index
    %c0_5 = arith.constant 0 : index
    %8 = vector.load %arg3[%c0_4, %c0_5] : memref<1x256xf32, #tpu.memory_space<vmem>>, vector<1x256xf32>
    %9 = vector.broadcast %8 : vector<1x256xf32> to vector<8x256xf32>
    %10 = arith.mulf %5, %9 : vector<8x256xf32>
    %11 = vector.shape_cast %10 : vector<8x256xf32> to vector<1x8x256xf32>
    %cst = arith.constant dense<0.000000e+00> : vector<1xf32>
    %12 = vector.multi_reduction <add>, %11, %cst [1, 2] : vector<1x8x256xf32> to vector<1xf32>
    %13 = vector.shape_cast %12 : vector<1xf32> to vector<1x1x1xf32>
    %14 = vector.extract %13[0, 0, 0] : f32 from vector<1x1x1xf32>
    %15 = vector.broadcast %14 : f32 to vector<1x1x1xf32>
    %c0_6 = arith.constant 0 : index
    %c0_7 = arith.constant 0 : index
    %c0_8 = arith.constant 0 : index
    %16 = vector.load %arg4[%c0_6, %c0_7, %c0_8] : memref<1x1x1xf32, #tpu.memory_space<vmem>>, vector<1x1x1xf32>
    tpu.vector_store %arg4[%c0_6, %c0_7, %c0_8], %15 {strides = array<i32>} : memref<1x1x1xf32, #tpu.memory_space<vmem>>, vector<1x1x1xf32>,
    %17 = vector.broadcast %8 : vector<1x256xf32> to vector<8x256xf32>
    %18 = arith.mulf %7, %17 : vector<8x256xf32>
    %19 = vector.shape_cast %18 : vector<8x256xf32> to vector<1x8x256xf32>
    %cst_9 = arith.constant dense<0.000000e+00> : vector<1xf32>
    %20 = vector.multi_reduction <add>, %19, %cst_9 [1, 2] : vector<1x8x256xf32> to vector<1xf32>
    %21 = vector.shape_cast %20 : vector<1xf32> to vector<1x1x1xf32>
    %22 = vector.extract %21[0, 0, 0] : f32 from vector<1x1x1xf32>
    %23 = vector.broadcast %22 : f32 to vector<1x1x1xf32>
    %c0_10 = arith.constant 0 : index
    %c0_11 = arith.constant 0 : index
    %c0_12 = arith.constant 0 : index
    %24 = vector.load %arg5[%c0_10, %c0_11, %c0_12] : memref<1x1x1xf32, #tpu.memory_space<vmem>>, vector<1x1x1xf32>
    tpu.vector_store %arg5[%c0_10, %c0_11, %c0_12], %23 {strides = array<i32>} : memref<1x1x1xf32, #tpu.memory_space<vmem>>, vector<1x1x1xf32>,
    return
  }
  func.func @transform_0(%arg0: i32) -> (i32, i32) {
    %c0_i32 = arith.constant 0 : i32
    %c0_i32_0 = arith.constant 0 : i32
    return %arg0, %c0_i32 : i32, i32
  }
  func.func @transform_1(%arg0: i32) -> (i32, i32) {
    %c0_i32 = arith.constant 0 : i32
    %c0_i32_0 = arith.constant 0 : i32
    return %arg0, %c0_i32 : i32, i32
  }
  func.func @transform_2(%arg0: i32) -> (i32, i32) {
    %c0_i32 = arith.constant 0 : i32
    %c0_i32_0 = arith.constant 0 : i32
    %c0_i32_1 = arith.constant 0 : i32
    return %c0_i32, %c0_i32_0 : i32, i32
  }
  func.func @transform_3(%arg0: i32) -> (i32, i32, i32) {
    %c0_i32 = arith.constant 0 : i32
    %c0_i32_0 = arith.constant 0 : i32
    %c0_i32_1 = arith.constant 0 : i32
    return %arg0, %c0_i32, %c0_i32_0 : i32, i32, i32
  }
  func.func @transform_4(%arg0: i32) -> (i32, i32, i32) {
    %c0_i32 = arith.constant 0 : i32
    %c0_i32_0 = arith.constant 0 : i32
    %c0_i32_1 = arith.constant 0 : i32
    return %arg0, %c0_i32, %c0_i32_0 : i32, i32, i32
  }
}

</mosaic_0001>

<bundles_post_ra>
// kernel: tpu_custom_call.1
= control target key start
LH: loop header
LB: loop body
LE: loop exit
PB: predicated region body
PF: predicated region fallthrough
CT: control target
= control target key end

     0   :  { %10 = vsyncpa [#allocation3], 0  ;;  %s339_s0 = inlined_call_operand.hbm [shape: f32[8,256], index: 0, kind: input, shape index: {}]   ;;  %s340_s1 = inlined_call_operand.hbm [shape: f32[8,256], index: 1, kind: input, shape index: {}]   ;;  %s341_s2 = inlined_call_operand.hbm [shape: f32[1,256], index: 2, kind: input, shape index: {}]   ;;  %s342_s3 = inlined_call_operand.hbm [shape: f32[1,1,1], index: 3, kind: output, shape index: {0}]   ;;  %s343_s4 = inlined_call_operand.hbm [shape: f32[1,1,1], index: 4, kind: output, shape index: {1}]  }
   0x1   :  { %11 = vsyncpa [#allocation6], 0 }
   0x2   :  { %12 = vsyncpa [#allocation4], 0  ;;  %s30_s17 = sshll.u32 %s340_s1, 4  ;;  %s31_s17 = int_to_ptr.hbm [resolvable:$true] %s30_s17 }
   0x3   :  { %13 = vsyncpa [#allocation10], 0  ;;  %s293_s18 = smov [#allocation5]   ;;  %s19_s22 = sshll.u32 %s339_s0, 4  ;;  %s20_s22 = int_to_ptr.hbm [resolvable:$true] %s19_s22 }
   0x4   :  { %s32_s19 = sshll.u32 %s293_s18, 4  ;;  %s294_s23 = smov [#allocation2]   ;;  %s33_s19 = int_to_ptr.vmem [resolvable:$true] %s32_s19 }
   0x5   :  { %35 = dma.hbm_to_vmem [thread:$0]  %s31_s17, 256, %s33_s19, [#allocation6]  }
   0x6   :  { %s21_s24 = sshll.u32 %s294_s23, 4  ;;  %s41_s27 = sshll.u32 %s341_s2, 4  ;;  %s22_s24 = int_to_ptr.vmem [resolvable:$true] %s21_s24  ;;  %s42_s27 = int_to_ptr.hbm [resolvable:$true] %s41_s27 }
   0x7   :  { %24 = dma.hbm_to_vmem [thread:$0]  %s20_s22, 256, %s22_s24, [#allocation3]  }
   0x8   :  { %s295_s1 = smov [#allocation7]  }
   0x9   :  { %s43_s28 = sshll.u32 %s295_s1, 4  ;;  %s44_s28 = int_to_ptr.vmem [resolvable:$true] %s43_s28 }
   0xa   :  { %46 = dma.hbm_to_vmem [thread:$0]  %s42_s27, 32, %s44_s28, [#allocation6]  }
   0xb   :  { %285 = dma.done.wait [#allocation3], 256  }
   0xc   :  { %286 = vsyncadd [#allocation3], 4294967040 }
   0xd   :  { %287 = dma.done.wait [#allocation6], 288  }
   0xe   :  { %288 = vsyncadd [#allocation6], 4294967008  ;;  %v61_v0 = vld [vmem:[#allocation5] sm:$0xff]  ;;  %v59_v1 = vld [vmem:[#allocation2] sm:$0xff]  ;;  %s296_s0 = smov 112   ;;  %v67_v4 = vlaneseq  ;;  %s297_s2 = smov [#allocation8]  }
   0xf   :  { %72 = vrot.lane.b32.xlu1 %v61_v0, %s296_s0  ;;  %63 = vrot.lane.b32.xlu0 %v59_v1, %s296_s0  ;;  %v62_v2 = vld [vmem:[#allocation5 + $0x8] sm:$0xff]  ;;  %v60_v3 = vld [vmem:[#allocation2 + $0x8] sm:$0xff]  ;;  %v86_v8 = vld [vmem:[#allocation7] sm:$0x3]  ;;  %s126_s29 = sshll.u32 %s297_s2, 4  ;;  %s128_s6 = sshll.u32 %s342_s3, 4  ;;  %s127_s29 = int_to_ptr.vmem [resolvable:$true] %s126_s29  ;;  %s129_s6 = int_to_ptr.hbm [resolvable:$true] %s128_s6 }
  0x10   :  { %v68_v7 = vand.u32 127, %v67_v4  ;;  %v88_v13 = vperm.slane %v86_v8, 0  ;;  %v89_v18 = vperm.slane %v86_v8, 1  ;;  %vm105_vm1 = vcmask 0   ;;  %s298_s8 = smov [#allocation9]   ;;  %s139_s12 = sshll.u32 %s343_s4, 4  ;;  %s140_s12 = int_to_ptr.hbm [resolvable:$true] %s139_s12 }
  0x11   :  { %s137_s9 = sshll.u32 %s298_s8, 4  ;;  %s138_s9 = int_to_ptr.vmem [resolvable:$true] %s137_s9 }
  0x12   :  { %vm69_vm0 = vcmp.lt.s32.totalorder %v68_v7, 112 }
  0x17   :  { %74 = vrot.lane.b32.xlu1 %v62_v2, %s296_s0  ;;  %65 = vrot.lane.b32.xlu0 %v60_v3, %s296_s0 }
  0x81   :  { %v73_v5 = vpop.permute.xlu1 %72  ;;  %v64_v6 = vpop.permute.xlu0 %63 }
  0x89   :  { %v75_v9 = vpop.permute.xlu1 %74  ;;  %v66_v10 = vpop.permute.xlu0 %65 }
  0x8a   :  { %v70_v11 = vsel %vm69_vm0, %v64_v6, %v66_v10  ;;  %v71_v12 = vsel %vm69_vm0, %v66_v10, %v64_v6  ;;  %v76_v14 = vsel %vm69_vm0, %v73_v5, %v75_v9  ;;  %v77_v15 = vsel %vm69_vm0, %v75_v9, %v73_v5 }
  0x8b   :  { %v78_v16 = vsub.f32 %v59_v1, %v70_v11  ;;  %v79_v17 = vsub.f32 %v60_v3, %v71_v12  ;;  %v82_v20 = vsub.f32 %v61_v0, %v76_v14  ;;  %v83_v21 = vsub.f32 %v62_v2, %v77_v15 }
  0x8d   :  { %v80_v19 = vand.u32 2147483647, %v78_v16  ;;  %v81_v22 = vand.u32 2147483647, %v79_v17  ;;  %v84_v25 = vand.u32 2147483647, %v82_v20 }
  0x8e   :  { %v85_v26 = vand.u32 2147483647, %v83_v21 }
  0x8f   :  { %v92_v23 = vmul.f32 %v88_v13, %v80_v19  ;;  %v93_v24 = vmul.f32 %v89_v18, %v81_v22  ;;  %v107_v28 = vmul.f32 %v88_v13, %v84_v25 }
  0x90   :  { %v108_v29 = vmul.f32 %v89_v18, %v85_v26 }
  0x91   :  { %v94_v27 = vadd.f32 %v93_v24, %v92_v23 }
  0x92   :  { %v109_v30 = vadd.f32 %v108_v29, %v107_v28 }
  0x93   :  { %95 = vadd.xlane.f32.xlu2 %v94_v27 }
  0x9b   :  { %110 = vadd.xlane.f32.xlu2 %v109_v30 }
 0x106   :  { %v96_v31 = vpop.xlane.xlu2 %95 }
 0x107   :  { %v97_v32 = vrot.slane %v96_v31, 4 }
 0x109   :  { %v98_v33 = vadd.f32 %v97_v32, %v96_v31 }
 0x10b   :  { %v99_v34 = vrot.slane %v98_v33, 2 }
 0x10d   :  { %v100_v35 = vadd.f32 %v99_v34, %v98_v33 }
 0x10e   :  { %v111_v36 = vpop.xlane.xlu2 %110 }
 0x10f   :  { %v112_v37 = vrot.slane %v111_v36, 4  ;;  %v101_v38 = vrot.slane %v100_v35, 1 }
 0x111   :  { %v113_v39 = vadd.f32 %v112_v37, %v111_v36  ;;  %v102_v40 = vadd.f32 %v101_v38, %v100_v35 }
 0x113   :  { %v114_v41 = vrot.slane %v113_v39, 2  ;;  %155 = vpush %v102_v40 }
 0x115   :  { %v115_v42 = vadd.f32 %v114_v41, %v113_v39 }
 0x117   :  { %v116_v43 = vrot.slane %v115_v42, 1 }
 0x119   :  { %v117_v44 = vadd.f32 %v116_v43, %v115_v42 }
 0x11b   :  { %157 = vpush %v117_v44 }
 0x144   :  { %s156_s7 = spop %155 }
 0x145   :  { %v104_v45 = vstv %s156_s7 }
 0x146   :  { %106 = vst.msk [vmem:[#allocation8] sm:$0x1] %vm105_vm1, %v104_v45 }
 0x147   :  { %131 = dma.vmem_to_hbm [thread:$0]  %s127_s29, 16, %s129_s6, [#allocation4]  }
 0x14c   :  { %s158_s13 = spop %157 }
 0x14d   :  { %v119_v46 = vstv %s158_s13 }
 0x14e   :  { %120 = vst.msk [vmem:[#allocation9] sm:$0x1] %vm105_vm1, %v119_v46 }
 0x14f   :  { %142 = dma.vmem_to_hbm [thread:$0]  %s138_s9, 16, %s140_s12, [#allocation10]  }
 0x150   :  { %289 = dma.done.wait [#allocation4], 16  }
 0x151   :  { %290 = vsyncadd [#allocation4], 4294967280 }
 0x152   :  { %291 = dma.done.wait [#allocation10], 16  }
 0x153   :  { %292 = vsyncadd [#allocation10], 4294967280 }
 0x154   :  { %151 = vsyncpa [#allocation3], 1 }
 0x155   :  { %152 = vsyncpa [#allocation6], 1 }
 0x156   :  { %153 = vsyncpa [#allocation4], 1 }
 0x157   :  { %154 = vsyncpa [#allocation10], 1 }

</bundles_post_ra>
